<compile_context>
chip_gen: v7x
topology: tpu7x:2x2x1
jax: 0.10.0
libtpu: 0.0.40
codegen_flags: <defaults>
</compile_context>

<pallas_src>
import functools
import math

import jax
import jax.numpy as jnp
from jax.experimental import pallas as pl
from jax.experimental.pallas import tpu as pltpu


def _pe_add_kernel(x_ref, pe_ref, out_ref, *, keep_prob, training, seed):
    """out = x + pe  (optionally followed by inverted dropout).

    x_ref  : VMEM ref (batch_block, seq_block, d)
    pe_ref : VMEM ref (seq_block, d)   -- broadcast over the batch dim
    out_ref: VMEM ref (batch_block, seq_block, d)
    """
    # Native-dtype add (bf16 VPU on v6e/v7x); no f32 upcast on the hot path.
    val = x_ref[...] + pe_ref[...]

    if training and keep_prob < 1.0:
        # Per-tile decorrelated seed (grid axes: (seq_block_idx, batch_block_idx)).
        pltpu.prng_seed(seed, pl.program_id(0), pl.program_id(1))
        bits = pltpu.bitcast(pltpu.prng_random_bits(val.shape), jnp.uint32)
        # Integer-domain keep test: P(bits < thresh) == keep_prob.
        thresh = jnp.uint32(min(int(round(keep_prob * (1 << 32))), (1 << 32) - 1))
        keep = bits < thresh
        val = jnp.where(keep, val.astype(jnp.float32) * (1.0 / keep_prob), 0.0)

    out_ref[...] = val.astype(out_ref.dtype)


def sinusoidal_pe(max_len, d_model, dtype=jnp.float32):
    """Same table the PyTorch module builds in __init__ (d_model must be even)."""
    assert d_model % 2 == 0, "sinusoidal PE assumes an even d_model"
    position = jnp.arange(max_len, dtype=jnp.float32)[:, None]          # (L, 1)
    div_term = jnp.exp(
        jnp.arange(0, d_model, 2, dtype=jnp.float32)
        * (-math.log(10000.0) / d_model)
    )                                                                    # (D/2,)
    angles = position * div_term                                         # (L, D/2)
    pe = jnp.zeros((max_len, d_model), dtype=jnp.float32)
    pe = pe.at[:, 0::2].set(jnp.sin(angles))
    pe = pe.at[:, 1::2].set(jnp.cos(angles))
    return pe.astype(dtype)


def _fold_factor(s, d):
    """Smallest k with (k*d) % 128 == 0 and s % k == 0 (1 if none exists)."""
    if d % 128 == 0:
        return 1
    k0 = 128 // math.gcd(d, 128)
    k = k0
    while k <= s:
        if s % k == 0:
            return k
        k += k0
    return 1  # no exact fold; fall back to masked stores (correct, slower)


def _choose_blocks(b, s, d, itemsize, *, tile_target_bytes=2 << 20):
    """Byte-budget-aware block choice for a (b, s, d) elementwise op.

    Returns (batch_block, seq_block, double_buffered_footprint_bytes).
    Targets ~1-4 MiB x tiles so grid-step overhead is amortized while the
    double-buffered footprint (2 * (2*x_tile + pe_tile)) stays far under
    v7x's 64 MiB/TC VMEM.
    """
    row_bytes = max(1, d * itemsize)

    # seq_block: divisor of s, multiple of 8 (or full extent), as large as the
    # byte budget allows.
    if s * row_bytes <= tile_target_bytes:
        seq_block = s
    else:
        cap_rows = max(8, (tile_target_bytes // row_bytes) // 8 * 8)
        seq_block = None
        for blk in range(min(cap_rows, (s // 8) * 8), 7, -8):
            if s % blk == 0:
                seq_block = blk
                break
        if seq_block is None:
            seq_block = s  # full extent is always layout-legal

    # batch_block: largest divisor of b keeping the x tile near the target.
    tile_bytes = seq_block * row_bytes
    batch_block = 1
    for bb in range(b, 0, -1):
        if b % bb == 0 and bb * tile_bytes <= max(tile_target_bytes, tile_bytes):
            batch_block = bb
            break

    # v7x has 2 TensorCores: if the whole array collapsed into one block but is
    # large enough that a second parallel step pays for its ~0.35us overhead,
    # split the batch so both cores get work.
    if batch_block == b and seq_block == s and b % 2 == 0 \
            and b * s * row_bytes >= (1 << 20):
        batch_block = b // 2

    footprint = 2 * (2 * batch_block * tile_bytes + seq_block * row_bytes)
    return batch_block, seq_block, footprint


def positional_encoding_forward(
    x, pe, *, dropout_p=0.0, training=False, seed=0,
    batch_block=None, seq_block=None,
):
    """JAX wrapper reproducing PositionalEncoding.forward."""
    b, s, d = x.shape
    assert pe.shape[0] >= s and pe.shape[1] == d, "pe table too small for input"

    orig_dtype = x.dtype
    pe = pe.astype(orig_dtype)  # ship pe in x.dtype (halves its DMA for bf16)

    # Lane-dense packing: fold k rows into the lane axis when d % 128 != 0 so
    # output stores are unmasked full-width vst instead of vst.msk.
    k = _fold_factor(s, d)
    if k > 1:
        x_k = x.reshape(b, s // k, k * d)
        pe_k = pe[:s].reshape(s // k, k * d)
    else:
        x_k = x
        pe_k = pe  # full table; index_map only ever touches the first s rows
    bf, sf, df = x_k.shape

    itemsize = jnp.dtype(orig_dtype).itemsize
    auto_bb, auto_sb, footprint = _choose_blocks(bf, sf, df, itemsize)
    bb = batch_block if batch_block is not None else auto_bb
    sb = seq_block if seq_block is not None else auto_sb
    assert sf % sb == 0 and bf % bb == 0, "block sizes must divide the array"

    # pe's block must be layout-legal on the array it is taken from:
    # (sb, df) needs sb % 8 == 0 or sb == pe rows.  Slice only when required.
    if sb % 8 != 0 and pe_k.shape[0] != sb:
        pe_k = pe_k[:sf]

    grid = (sf // sb, bf // bb)  # seq outer, batch inner (pe block stays resident)

    kernel = functools.partial(
        _pe_add_kernel,
        keep_prob=1.0 - float(dropout_p),
        training=bool(training),
        seed=int(seed),
    )

    cost = pl.CostEstimate(
        flops=b * s * d,
        transcendentals=0,
        bytes_accessed=(2 * b * s * d + s * d) * itemsize,
    )

    out = pl.pallas_call(
        kernel,
        grid=grid,
        in_specs=[
            pl.BlockSpec((bb, sb, df), lambda si, bi: (bi, si, 0)),
            pl.BlockSpec((sb, df), lambda si, bi: (si, 0)),
        ],
        out_specs=pl.BlockSpec((bb, sb, df), lambda si, bi: (bi, si, 0)),
        out_shape=jax.ShapeDtypeStruct((bf, sf, df), orig_dtype),
        compiler_params=pltpu.CompilerParams(
            dimension_semantics=("parallel", "parallel"),
            vmem_limit_bytes=int(min(max(2 * footprint, 32 << 20), 48 << 20)),
        ),
        cost_estimate=cost,
    )(x_k, pe_k)

    return out.reshape(b, s, d) if k > 1 else out


if __name__ == "__main__":
    # Small deterministic setup consistent with PositionalEncoding(d_model, dropout).
    B, S, D_MODEL = 2, 8, 32
    MAX_LEN = 64
    DROPOUT_P = 0.1

    key0, key1 = jax.random.split(jax.random.PRNGKey(0))
    x = jax.random.normal(key0, (B, S, D_MODEL), dtype=jnp.float32)
    pe = sinusoidal_pe(MAX_LEN, D_MODEL)

    # Eval-mode forward (dropout is identity), matching module.eval().
    # d_model=32 exercises the lane-dense fold path (k=4 -> last dim 128).
    out = positional_encoding_forward(x, pe, dropout_p=DROPOUT_P, training=False)
    out = jax.block_until_ready(out)
    ref = x + pe[None, :S, :]
    assert out.shape == (B, S, D_MODEL)
    assert jnp.allclose(out, ref, atol=1e-6, rtol=1e-6)

    # Second shape: d_model multiple of 128 (no fold); full pe table is passed
    # unsliced and the batch is folded into the block.
    B2, S2, D2 = 2, 16, 128
    x2 = jax.random.normal(key1, (B2, S2, D2), dtype=jnp.float32)
    pe2 = sinusoidal_pe(MAX_LEN, D2)
    out2 = jax.block_until_ready(
        positional_encoding_forward(x2, pe2, dropout_p=DROPOUT_P, training=False)
    )
    ref2 = x2 + pe2[None, :S2, :]
    assert jnp.allclose(out2, ref2, atol=1e-6, rtol=1e-6)

    print("KERNEL_OK")
</pallas_src>

<mosaic_0001>
module attributes {stable_mosaic.version = 11 : i64} {
  func.func @_pe_add_kernel(%arg0: i32, %arg1: i32, %arg2: memref<2x2x128xf32, #tpu.memory_space<vmem>>, %arg3: memref<2x128xf32, #tpu.memory_space<vmem>>, %arg4: memref<2x2x128xf32, #tpu.memory_space<vmem>>) attributes {dimension_semantics = [#tpu.dimension_semantics<parallel>, #tpu.dimension_semantics<parallel>], iteration_bounds = array<i64: 1, 1>, scalar_prefetch = 0 : i64, scratch_operands = 0 : i64, tpu.core_type = #tpu.core_type<tc>, window_params = [{transform_indices = @transform_0, window_bounds = array<i64: 2, 2, 128>}, {transform_indices = @transform_1, window_bounds = array<i64: 2, 128>}, {transform_indices = @transform_2, window_bounds = array<i64: 2, 2, 128>}]} {
    %c0 = arith.constant 0 : index
    %c0_0 = arith.constant 0 : index
    %c0_1 = arith.constant 0 : index
    %0 = vector.load %arg2[%c0, %c0_0, %c0_1] : memref<2x2x128xf32, #tpu.memory_space<vmem>>, vector<2x2x128xf32>
    %c0_2 = arith.constant 0 : index
    %c0_3 = arith.constant 0 : index
    %1 = vector.load %arg3[%c0_2, %c0_3] : memref<2x128xf32, #tpu.memory_space<vmem>>, vector<2x128xf32>
    %2 = vector.shape_cast %1 : vector<2x128xf32> to vector<1x2x128xf32>
    %3 = vector.broadcast %2 : vector<1x2x128xf32> to vector<2x2x128xf32>
    %4 = arith.addf %0, %3 : vector<2x2x128xf32>
    %c0_4 = arith.constant 0 : index
    %c0_5 = arith.constant 0 : index
    %c0_6 = arith.constant 0 : index
    %5 = vector.load %arg4[%c0_4, %c0_5, %c0_6] : memref<2x2x128xf32, #tpu.memory_space<vmem>>, vector<2x2x128xf32>
    tpu.vector_store %arg4[%c0_4, %c0_5, %c0_6], %4 {strides = array<i32>} : memref<2x2x128xf32, #tpu.memory_space<vmem>>, vector<2x2x128xf32>,
    return
  }
  func.func @transform_0(%arg0: i32, %arg1: i32) -> (i32, i32, i32) {
    %c0_i32 = arith.constant 0 : i32
    %c0_i32_0 = arith.constant 0 : i32
    return %arg1, %arg0, %c0_i32 : i32, i32, i32
  }
  func.func @transform_1(%arg0: i32, %arg1: i32) -> (i32, i32) {
    %c0_i32 = arith.constant 0 : i32
    %c0_i32_0 = arith.constant 0 : i32
    return %arg0, %c0_i32 : i32, i32
  }
  func.func @transform_2(%arg0: i32, %arg1: i32) -> (i32, i32, i32) {
    %c0_i32 = arith.constant 0 : i32
    %c0_i32_0 = arith.constant 0 : i32
    return %arg1, %arg0, %c0_i32 : i32, i32, i32
  }
}

</mosaic_0001>

<bundles_post_ra>
// kernel: tpu_custom_call.1
= control target key start
LH: loop header
LB: loop body
LE: loop exit
PB: predicated region body
PF: predicated region fallthrough
CT: control target
= control target key end

     0   :  { %7 = vsyncpa [#allocation3], 0  ;;  %s154_s0 = inlined_call_operand.hbm [shape: f32[2,2,128], index: 0, kind: input, shape index: {}]   ;;  %s155_s1 = inlined_call_operand.vmem [shape: f32[2,128], index: 1, kind: input, shape index: {}]   ;;  %s156_s2 = inlined_call_operand.hbm [shape: f32[2,2,128], index: 2, kind: output, shape index: {}]  }
   0x1   :  { %8 = vsyncpa [#allocation4], 0  ;;  %s102_s9 = smov [#allocation2]   ;;  %s54_s13 = scalar_lea.hbm %s154_s0, 64 }
   0x2   :  { %s14_s10 = sshll.u32 %s102_s9, 4  ;;  %p55_p0 = scmp.ne.s32.totalorder %s154_s0, %s54_s13  ;;  %s15_s10 = int_to_ptr.vmem [resolvable:$true] %s14_s10 }
   0x3   :  { %p58_p1 = scmp.lt.u32.totalorder %s54_s13, %s154_s0 }
   0x5   :  { %p60_p2 = pnand %p58_p1, %p55_p0 }
   0x7   :  { %63 = shalt.err (!%p60_p2)
}
   0x8   :  { %s64_s18 = scalar_lea.vmem %s15_s10, 64  ;;  %p69_p4 = scmp.lt.s32.totalorder %s15_s10, %s15_s10 }
   0x9   :  { %p65_p3 = scmp.ne.s32.totalorder %s15_s10, %s64_s18  ;;  %p70_p5 = scmp.lt.s32.totalorder %s64_s18, %s64_s18 }
   0xb   :  { %p71_p6 = por %p70_p5, %p69_p4 }
   0xd   :  { %p72_p7 = pnand %p71_p6, %p65_p3 }
   0xf   :  { %75 = shalt.err (!%p72_p7)
}
  0x10   :  { %s103_s19 = smov 32   ;;  %s104_s20 = smov 2  }
  0x11   :  { %20 = dma.hbm_to_vmem [thread:$0]  %s154_s0, 64, %s15_s10, [#allocation3], %s103_s19, %s103_s19, %s104_s20  }
  0x12   :  { %98 = dma.done.wait [#allocation3], 64  }
  0x13   :  { %99 = vsyncadd [#allocation3], 4294967232  ;;  %s105_s23 = smov [#allocation5]   ;;  %v26_v0 = vld [vmem:[#allocation2] sm:$0x3] }
  0x14   :  { %s38_s24 = sshll.u32 %s105_s23, 4  ;;  %v28_v1 = vld [vmem:[%s155_s1] sm:$0x3]  ;;  %v27_v2 = vld [vmem:[#allocation2 + $0x2] sm:$0x3]  ;;  %s39_s24 = int_to_ptr.vmem [resolvable:$true] %s38_s24 }
  0x15   :  { %v29_v3 = vadd.f32 %v28_v1, %v26_v0  ;;  %v30_v4 = vadd.f32 %v28_v1, %v27_v2  ;;  %s76_s27 = scalar_lea.vmem %s39_s24, 64  ;;  %p81_p9 = scmp.lt.s32.totalorder %s39_s24, %s39_s24 }
  0x16   :  { %p77_p8 = scmp.ne.s32.totalorder %s39_s24, %s76_s27  ;;  %p82_p10 = scmp.lt.s32.totalorder %s76_s27, %s76_s27 }
  0x17   :  { %31 = vst [vmem:[#allocation5] sm:$0x3] %v29_v3  ;;  %32 = vst [vmem:[#allocation5 + $0x2] sm:$0x3] %v30_v4 }
  0x18   :  { %p83_p11 = por %p82_p10, %p81_p9 }
  0x1a   :  { %p84_p12 = pnand %p83_p11, %p77_p8 }
  0x1c   :  { %87 = shalt.err (!%p84_p12)
}
  0x1d   :  { %s88_s29 = scalar_lea.hbm %s156_s2, 64 }
  0x1e   :  { %p89_p13 = scmp.ne.s32.totalorder %s156_s2, %s88_s29  ;;  %p92_p0 = scmp.lt.u32.totalorder %s88_s29, %s156_s2 }
  0x20   :  { %p94_p1 = pnand %p92_p0, %p89_p13 }
  0x22   :  { %97 = shalt.err (!%p94_p1)
}
  0x23   :  { %44 = dma.vmem_to_hbm [thread:$0]  %s39_s24, 64, %s156_s2, [#allocation4], %s103_s19, %s103_s19, %s104_s20  }
  0x24   :  { %100 = dma.done.wait [#allocation4], 64  }
  0x25   :  { %101 = vsyncadd [#allocation4], 4294967232 }
  0x26   :  { %48 = vsyncpa [#allocation3], 1 }
  0x27   :  { %49 = vsyncpa [#allocation4], 1 }

</bundles_post_ra>
